<compile_context>
chip_gen: v7x
topology: tpu7x:2x2x1
jax: 0.10.0
libtpu: 0.0.40
codegen_flags: <defaults>
</compile_context>

<pallas_src>
import jax
import jax.numpy as jnp
from jax.experimental import pallas as pl
from jax.experimental.pallas import tpu as pltpu

EPS = 1e-4  # spectral_norm eps


def _round_up(n, m):
    return ((n + m - 1) // m) * m


def _sublane(dtype):
    # minimum second-minor alignment for a given element width (f32: 8, bf16: 16)
    return max(8, 32 // jnp.dtype(dtype).itemsize)


def g_z_kernel(inv_sigma_ref, x_ref, wt_ref, b_ref, o_ref):
    """One (batch, out) tile: out = (x @ W^T) * inv_sigma + b.

    x_ref:  (TB, I_pad)  matmul dtype (bf16 by default)
    wt_ref: (I_pad, TO)  matmul dtype, pre-transposed weight (resident)
    b_ref:  (1, TO)      f32 bias
    inv_sigma_ref: (1,1) f32 scalar in SMEM
    o_ref:  (TB, TO)     f32
    """
    y = jnp.dot(x_ref[...], wt_ref[...], preferred_element_type=jnp.float32)
    o_ref[...] = y * inv_sigma_ref[0, 0] + b_ref[...]


def prepare_g_z_params(w, b, *, matmul_dtype=jnp.bfloat16):
    """One-time parameter prep (pad + transpose + cast). Reuse across forwards."""
    O, I = w.shape
    I_pad = _round_up(max(I, 128), 128)
    O_pad = _round_up(max(O, 128), 128)

    # Tile the output axis only when the resident W block gets large
    # (v7x: 64 MiB physical / 32 MiB scoped default per TC).
    w_item = jnp.dtype(matmul_dtype).itemsize
    if I_pad * O_pad * w_item > (16 << 20):
        out_tile = 512
        O_pad = _round_up(O_pad, out_tile)
    else:
        out_tile = O_pad

    # W stored transposed (I_pad, O_pad): contraction axis lands on the RHS sublane
    # axis, so the MXU consumes it directly, no in-kernel transpose / layout pass.
    # Zero padding is exact (padded rows/cols contribute nothing).
    wt_p = (jnp.zeros((I_pad, O_pad), matmul_dtype)
            .at[:I, :O].set(w.T.astype(matmul_dtype)))
    b_p = jnp.zeros((1, O_pad), jnp.float32).at[0, :O].set(b.astype(jnp.float32))

    return dict(wt_p=wt_p, b_p=b_p, in_features=I, out_features=O,
                I_pad=I_pad, O_pad=O_pad, out_tile=out_tile,
                matmul_dtype=jnp.dtype(matmul_dtype))


def g_z_forward(x, w, b, u, *, params=None, batch_tile=512,
                matmul_dtype=jnp.bfloat16):
    """x: (B, in), w: (out, in), b: (out,), u: (out,) -> (B, out) f32."""
    if params is None:
        params = prepare_g_z_params(w, b, matmul_dtype=matmul_dtype)
    wt_p, b_p = params["wt_p"], params["b_p"]
    I, O = params["in_features"], params["out_features"]
    I_pad, O_pad, to = params["I_pad"], params["O_pad"], params["out_tile"]
    mdt = params["matmul_dtype"]

    B = x.shape[0]

    # --- power iteration (eval semantics, u not updated), hoisted to the wrapper ---
    # Two tiny f32 matvecs: effectively free in XLA, vs. being recomputed per grid
    # tile / per TensorCore inside the kernel.
    w32 = w.astype(jnp.float32)
    u32 = u.astype(jnp.float32)
    v = u32 @ w32                                      # (in,)  == W^T u
    v = v / jnp.maximum(jnp.linalg.norm(v), EPS)
    wv = w32 @ v                                       # (out,) == W v
    s = jnp.sum(wv * wv)
    sigma = s / jnp.maximum(jnp.sqrt(s), EPS)          # == u_new . (W v)
    inv_sigma = (1.0 / sigma).reshape(1, 1).astype(jnp.float32)

    # --- batch tiling -----------------------------------------------------------
    sub = _sublane(mdt)
    B_pad = _round_up(max(B, sub), sub)
    if B_pad >= 2 * sub:
        # Keep >= 2 batch tiles whenever possible so both v7x TensorCores get work.
        tb = min(batch_tile, _round_up(-(-B_pad // 2), sub))
    else:
        tb = B_pad
    B_pad = _round_up(B_pad, tb)

    # Pad x directly in the matmul dtype (no per-tile cast; halves x HBM traffic
    # on the bf16 path).
    x_p = jnp.zeros((B_pad, I_pad), mdt).at[:B, :I].set(x.astype(mdt))

    grid = (B_pad // tb, O_pad // to)

    # --- VMEM budget (double-buffered blocks) with headroom; never below 32 MiB ---
    w_item = mdt.itemsize
    needed = (2 * tb * I_pad * w_item        # x blocks
              + 2 * I_pad * to * w_item      # W blocks
              + 2 * tb * to * 4              # out blocks
              + 2 * to * 4                   # bias blocks
              + (1 << 20))                   # slack
    vmem_limit = int(min(max(needed, 32 << 20), 100 << 20))

    cost = pl.CostEstimate(
        flops=2 * B_pad * I_pad * O_pad,
        transcendentals=0,
        bytes_accessed=int(x_p.size * x_p.dtype.itemsize
                           + wt_p.size * wt_p.dtype.itemsize
                           + b_p.size * 4
                           + B_pad * O_pad * 4),
    )

    out = pl.pallas_call(
        g_z_kernel,
        out_shape=jax.ShapeDtypeStruct((B_pad, O_pad), jnp.float32),
        grid=grid,
        in_specs=[
            pl.BlockSpec(memory_space=pltpu.MemorySpace.SMEM),   # inv_sigma (1,1)
            pl.BlockSpec((tb, I_pad), lambda i, j: (i, 0)),      # x: tiled over batch
            pl.BlockSpec((I_pad, to), lambda i, j: (0, j)),      # W^T: resident per out tile
            pl.BlockSpec((1, to), lambda i, j: (0, j)),          # bias
        ],
        out_specs=pl.BlockSpec((tb, to), lambda i, j: (i, j)),
        compiler_params=pltpu.CompilerParams(
            dimension_semantics=("parallel", "parallel"),
            vmem_limit_bytes=vmem_limit),
        cost_estimate=cost,
    )(inv_sigma, x_p, wt_p, b_p)

    return out[:B, :O]


def reference(x, w, b, u):
    """Pure-JAX reference mirroring torch spectral_norm (eval) + linear."""
    v = u @ w
    v = v / jnp.maximum(jnp.linalg.norm(v), EPS)
    u_new = w @ v
    u_new = u_new / jnp.maximum(jnp.linalg.norm(u_new), EPS)
    sigma = u_new @ (w @ v)
    return x @ (w / sigma).T + b


if __name__ == "__main__":
    key = jax.random.PRNGKey(0)
    B, IN, OUT = 8, 32, 16

    k_x, k_w, k_b, k_u = jax.random.split(key, 4)
    # Deterministic parameter init (mimics nn.Linear uniform(-1/sqrt(in), 1/sqrt(in)))
    bound = 1.0 / jnp.sqrt(jnp.float32(IN))
    w = jax.random.uniform(k_w, (OUT, IN), jnp.float32, -bound, bound)
    b = jax.random.uniform(k_b, (OUT,), jnp.float32, -bound, bound)
    # spectral_norm's u buffer: normalized gaussian vector of size out_features
    u = jax.random.normal(k_u, (OUT,), jnp.float32)
    u = u / jnp.maximum(jnp.linalg.norm(u), EPS)

    x = jax.random.normal(k_x, (B, IN), jnp.float32)

    ref = reference(x, w, b, u)

    # Default (perf) path: bf16 MXU feeds, f32 accumulation, params prepared once.
    params_bf16 = prepare_g_z_params(w, b, matmul_dtype=jnp.bfloat16)
    out = g_z_forward(x, w, b, u, params=params_bf16)
    out = jax.block_until_ready(out)
    assert out.shape == (B, OUT)
    assert jnp.allclose(out, ref, atol=2e-2, rtol=2e-2), "bf16 path mismatch vs reference"

    # f32 path retained for tight-tolerance validation of the kernel structure.
    params_f32 = prepare_g_z_params(w, b, matmul_dtype=jnp.float32)
    out32 = g_z_forward(x, w, b, u, params=params_f32, matmul_dtype=jnp.float32)
    out32 = jax.block_until_ready(out32)
    assert jnp.allclose(out32, ref, atol=1e-5, rtol=1e-5), "f32 path mismatch vs reference"

    print("KERNEL_OK")
</pallas_src>

<mosaic_0001>
module attributes {stable_mosaic.version = 11 : i64} {
  func.func @g_z_kernel(%arg0: i32, %arg1: i32, %arg2: memref<1x1xf32, #tpu.memory_space<smem>>, %arg3: memref<16x128xbf16, #tpu.memory_space<vmem>>, %arg4: memref<128x128xbf16, #tpu.memory_space<vmem>>, %arg5: memref<1x128xf32, #tpu.memory_space<vmem>>, %arg6: memref<16x128xf32, #tpu.memory_space<vmem>>) attributes {dimension_semantics = [#tpu.dimension_semantics<parallel>, #tpu.dimension_semantics<parallel>], iteration_bounds = array<i64: 1, 1>, scalar_prefetch = 0 : i64, scratch_operands = 0 : i64, tpu.core_type = #tpu.core_type<tc>, window_params = [{transform_indices = @transform_0, window_bounds = array<i64: 1, 1>}, {transform_indices = @transform_1, window_bounds = array<i64: 16, 128>}, {transform_indices = @transform_2, window_bounds = array<i64: 128, 128>}, {transform_indices = @transform_3, window_bounds = array<i64: 1, 128>}, {transform_indices = @transform_4, window_bounds = array<i64: 16, 128>}]} {
    %c0 = arith.constant 0 : index
    %c0_0 = arith.constant 0 : index
    %0 = vector.load %arg3[%c0, %c0_0] : memref<16x128xbf16, #tpu.memory_space<vmem>>, vector<16x128xbf16>
    %c0_1 = arith.constant 0 : index
    %c0_2 = arith.constant 0 : index
    %1 = vector.load %arg4[%c0_1, %c0_2] : memref<128x128xbf16, #tpu.memory_space<vmem>>, vector<128x128xbf16>
    %cst = arith.constant dense<0.000000e+00> : vector<16x128xf32>
    %2 = tpu.matmul %0, %1, %cst {dimension_numbers = #tpu.dot_dimension_numbers<[1], [0], [0], [1], [0, 0, 1, 1], [], []>} : vector<16x128xbf16>, vector<128x128xbf16>, vector<16x128xf32> -> vector<16x128xf32>
    %c0_3 = arith.constant 0 : index
    %c0_4 = arith.constant 0 : index
    %3 = memref.load %arg2[%c0_3, %c0_4] : memref<1x1xf32, #tpu.memory_space<smem>>
    %4 = vector.broadcast %3 : f32 to vector<16x128xf32>
    %5 = arith.mulf %2, %4 : vector<16x128xf32>
    %c0_5 = arith.constant 0 : index
    %c0_6 = arith.constant 0 : index
    %6 = vector.load %arg5[%c0_5, %c0_6] : memref<1x128xf32, #tpu.memory_space<vmem>>, vector<1x128xf32>
    %7 = vector.broadcast %6 : vector<1x128xf32> to vector<16x128xf32>
    %8 = arith.addf %5, %7 : vector<16x128xf32>
    %c0_7 = arith.constant 0 : index
    %c0_8 = arith.constant 0 : index
    %9 = vector.load %arg6[%c0_7, %c0_8] : memref<16x128xf32, #tpu.memory_space<vmem>>, vector<16x128xf32>
    tpu.vector_store %arg6[%c0_7, %c0_8], %8 {strides = array<i32>} : memref<16x128xf32, #tpu.memory_space<vmem>>, vector<16x128xf32>,
    return
  }
  func.func @transform_0(%arg0: i32, %arg1: i32) -> (i32, i32) {
    %c0_i32 = arith.constant 0 : i32
    %c0_i32_0 = arith.constant 0 : i32
    %c0_i32_1 = arith.constant 0 : i32
    return %c0_i32, %c0_i32_0 : i32, i32
  }
  func.func @transform_1(%arg0: i32, %arg1: i32) -> (i32, i32) {
    %c0_i32 = arith.constant 0 : i32
    %c0_i32_0 = arith.constant 0 : i32
    return %arg0, %c0_i32 : i32, i32
  }
  func.func @transform_2(%arg0: i32, %arg1: i32) -> (i32, i32) {
    %c0_i32 = arith.constant 0 : i32
    %c0_i32_0 = arith.constant 0 : i32
    return %c0_i32, %arg1 : i32, i32
  }
  func.func @transform_3(%arg0: i32, %arg1: i32) -> (i32, i32) {
    %c0_i32 = arith.constant 0 : i32
    %c0_i32_0 = arith.constant 0 : i32
    return %c0_i32, %arg1 : i32, i32
  }
  func.func @transform_4(%arg0: i32, %arg1: i32) -> (i32, i32) {
    %c0_i32 = arith.constant 0 : i32
    return %arg0, %arg1 : i32, i32
  }
}

</mosaic_0001>

<bundles_post_ra>
// kernel: tpu_custom_call.1
= control target key start
LH: loop header
LB: loop body
LE: loop exit
PB: predicated region body
PF: predicated region fallthrough
CT: control target
= control target key end

     0   :  { %10 = vsyncpa [#allocation4], 0  ;;  %s399_s0 = inlined_call_operand.<no memory space> [shape: f32[1,1], index: 0, kind: input, shape index: {}]   ;;  %s400_s1 = inlined_call_operand.hbm [shape: bf16[16,128], index: 1, kind: input, shape index: {}]   ;;  %s401_s2 = inlined_call_operand.hbm [shape: bf16[128,128], index: 2, kind: input, shape index: {}]   ;;  %s402_s3 = inlined_call_operand.vmem [shape: f32[1,128], index: 3, kind: input, shape index: {}]   ;;  %s403_s4 = inlined_call_operand.hbm [shape: f32[16,128], index: 4, kind: output, shape index: {}]  }
   0x1   :  { %11 = vsyncpa [#allocation7], 0 }
   0x2   :  { %12 = vsyncpa [#allocation5], 0  ;;  %s323_s15 = smov [#allocation3]   ;;  %s251_s19 = scalar_lea.hbm %s400_s1, 128 }
   0x3   :  { %s20_s16 = sshll.u32 %s323_s15, 4  ;;  %p252_p0 = scmp.ne.s32.totalorder %s400_s1, %s251_s19  ;;  %s21_s16 = int_to_ptr.vmem [resolvable:$true] %s20_s16 }
   0x4   :  { %p255_p1 = scmp.lt.u32.totalorder %s251_s19, %s400_s1 }
   0x6   :  { %p257_p2 = pnand %p255_p1, %p252_p0 }
   0x8   :  { %260 = shalt.err (!%p257_p2)
}
   0x9   :  { %s261_s24 = scalar_lea.vmem %s21_s16, 128  ;;  %p266_p4 = scmp.lt.s32.totalorder %s21_s16, %s21_s16 }
   0xa   :  { %p262_p3 = scmp.ne.s32.totalorder %s21_s16, %s261_s24  ;;  %p267_p5 = scmp.lt.s32.totalorder %s261_s24, %s261_s24 }
   0xc   :  { %p268_p6 = por %p267_p5, %p266_p4 }
   0xe   :  { %p269_p7 = pnand %p268_p6, %p262_p3 }
  0x10   :  { %272 = shalt.err (!%p269_p7)
}
  0x11   :  { %s324_s25 = smov 64   ;;  %s325_s26 = smov 4  }
  0x12   :  { %26 = dma.hbm_to_vmem [thread:$0]  %s400_s1, 128, %s21_s16, [#allocation4], %s324_s25, %s324_s25, %s325_s26  }
  0x13   :  { %s326_s29 = smov [#allocation6]   ;;  %s273_s7 = scalar_lea.hbm %s401_s2, 1024 }
  0x14   :  { %s32_s30 = sshll.u32 %s326_s29, 4  ;;  %p274_p8 = scmp.ne.s32.totalorder %s401_s2, %s273_s7  ;;  %s33_s30 = int_to_ptr.vmem [resolvable:$true] %s32_s30 }
  0x15   :  { %p277_p9 = scmp.lt.u32.totalorder %s273_s7, %s401_s2 }
  0x17   :  { %p279_p10 = pnand %p277_p9, %p274_p8 }
  0x19   :  { %282 = shalt.err (!%p279_p10)
}
  0x1a   :  { %s283_s12 = scalar_lea.vmem %s33_s30, 1024  ;;  %p288_p12 = scmp.lt.s32.totalorder %s33_s30, %s33_s30 }
  0x1b   :  { %p284_p11 = scmp.ne.s32.totalorder %s33_s30, %s283_s12  ;;  %p289_p13 = scmp.lt.s32.totalorder %s283_s12, %s283_s12 }
  0x1d   :  { %p290_p0 = por %p289_p13, %p288_p12 }
  0x1f   :  { %p291_p1 = pnand %p290_p0, %p284_p11 }
  0x21   :  { %294 = shalt.err (!%p291_p1)
}
  0x22   :  { %38 = dma.hbm_to_vmem [thread:$0]  %s401_s2, 1024, %s33_s30, [#allocation7], %s324_s25, %s324_s25, %s325_s26  }
  0x23   :  { %317 = dma.done.wait [#allocation4], 128  }
  0x24   :  { %318 = vsyncadd [#allocation4], 4294967168 }
  0x25   :  { %319 = dma.done.wait [#allocation7], 1024  }
  0x26   :  { %320 = vsyncadd [#allocation7], 4294966272  ;;  %v327_v0 = vmov 0.0   ;;  %vm328_vm0 = vmmov 0   ;;  %v242_v1 = vld [vmem:[#allocation6] sm:$0xff]   ;;  %v243_v2 = vld [vmem:[#allocation6 + $0x8] sm:$0xff]   ;;  %v162_v10 = vstv %s399_s0 }
  0x27   :  { %213 = vmatprep.subr.bf16.mxu0 %v327_v0  ;;  %229 = vmatprep.mubr.msk.bf16.mxu0 %vm328_vm0, %v327_v0  ;;  %v244_v3 = vld [vmem:[#allocation6 + $0x10] sm:$0xff]   ;;  %v245_v4 = vld [vmem:[#allocation6 + $0x18] sm:$0xff]   ;;  %v246_v5 = vld [vmem:[#allocation6 + $0x20] sm:$0xff]   ;;  %s329_s17 = smov [#allocation8]  }
  0x28   :  { %214 = vmatpush3.bf16.msra.mxu0 %v242_v1  ;;  %v247_v6 = vld [vmem:[#allocation6 + $0x28] sm:$0xff]   ;;  %v248_v7 = vld [vmem:[#allocation6 + $0x30] sm:$0xff]   ;;  %v249_v8 = vld [vmem:[#allocation6 + $0x38] sm:$0xff]   ;;  %s181_s18 = sshll.u32 %s329_s17, 4  ;;  %s182_s18 = int_to_ptr.vmem [resolvable:$true] %s181_s18 }
  0x29   :  { %215 = vmatprep.subr.bf16.mxu0 %v327_v0  ;;  %v250_v9 = vld [vmem:[#allocation3] sm:$0xff]   ;;  %s295_s19 = scalar_lea.vmem %s182_s18, 256  ;;  %p300_p3 = scmp.lt.s32.totalorder %s182_s18, %s182_s18 }
  0x2a   :  { %v203_v12 = vld [vmem:[%s402_s3] ss:$0 sm:$0xff]  ;;  %p296_p2 = scmp.ne.s32.totalorder %s182_s18, %s295_s19  ;;  %p301_p4 = scmp.lt.s32.totalorder %s295_s19, %s295_s19 }
  0x2c   :  { %216 = vmatpush3.bf16.msra.mxu0 %v243_v2  ;;  %p302_p5 = por %p301_p4, %p300_p3 }
  0x2d   :  { %217 = vmatprep.subr.bf16.mxu0 %v327_v0 }
  0x2e   :  { %p303_p6 = pnand %p302_p5, %p296_p2 }
  0x30   :  { %218 = vmatpush3.bf16.msra.mxu0 %v244_v3 }
  0x31   :  { %219 = vmatprep.subr.bf16.mxu0 %v327_v0 }
  0x34   :  { %220 = vmatpush3.bf16.msra.mxu0 %v245_v4 }
  0x35   :  { %221 = vmatprep.subr.bf16.mxu0 %v327_v0 }
  0x38   :  { %222 = vmatpush3.bf16.msra.mxu0 %v246_v5 }
  0x39   :  { %223 = vmatprep.subr.bf16.mxu0 %v327_v0 }
  0x3c   :  { %224 = vmatpush3.bf16.msra.mxu0 %v247_v6 }
  0x3d   :  { %225 = vmatprep.subr.bf16.mxu0 %v327_v0 }
  0x40   :  { %226 = vmatpush3.bf16.msra.mxu0 %v248_v7 }
  0x41   :  { %227 = vmatprep.subr.bf16.mxu0 %v327_v0 }
  0x44   :  { %228 = vmatpush3.bf16.msra.mxu0 %v249_v8 }
  0x47   :  { %230 = vmatmul.mubr.bf16.vlgmr.msra.gmra.mrb[0].mxu0 %v250_v9 }
 0x11a   :  { %v154_v11 = vpop.f32.mrb[0].mxu0 }
 0x11b   :  { %v163_v13 = vmul.f32 %v162_v10, %v154_v11  ;;  %v231_v14 = vpop.f32.mrb[1].mxu0 }
 0x11c   :  { %v157_v15 = vpop.f32.mrb[2].mxu0 }
 0x11d   :  { %v172_v16 = vadd.f32 %v203_v12, %v163_v13  ;;  %v164_v17 = vmul.f32 %v162_v10, %v157_v15  ;;  %v232_v18 = vpop.f32.mrb[3].mxu0 }
 0x11f   :  { %174 = vst [vmem:[#allocation8] sm:$0xff] %v172_v16  ;;  %v173_v19 = vadd.f32 %v203_v12, %v164_v17 }
 0x121   :  { %175 = vst [vmem:[#allocation8 + $0x8] sm:$0xff] %v173_v19 }
 0x122   :  { %306 = shalt.err (!%p303_p6)
}
 0x123   :  { %s307_s20 = scalar_lea.hbm %s403_s4, 256 }
 0x124   :  { %p308_p7 = scmp.ne.s32.totalorder %s403_s4, %s307_s20  ;;  %p311_p8 = scmp.lt.u32.totalorder %s307_s20, %s403_s4 }
 0x126   :  { %p313_p9 = pnand %p311_p8, %p308_p7 }
 0x128   :  { %316 = shalt.err (!%p313_p9)
}
 0x129   :  { %s330_s25 = smov 128   ;;  %s331_s26 = smov 8  }
 0x12a   :  { %187 = dma.vmem_to_hbm [thread:$0]  %s182_s18, 256, %s403_s4, [#allocation5], %s330_s25, %s330_s25, %s331_s26  }
 0x12b   :  { %321 = dma.done.wait [#allocation5], 256  }
 0x12c   :  { %322 = vsyncadd [#allocation5], 4294967040 }
 0x12d   :  { %191 = vsyncpa [#allocation4], 1 }
 0x12e   :  { %192 = vsyncpa [#allocation7], 1 }
 0x12f   :  { %193 = vsyncpa [#allocation5], 1 }

</bundles_post_ra>
